<compile_context>
chip_gen: v5e
topology: v5e:2x2
jax: 0.10.0
libtpu: 0.0.40
codegen_flags: <defaults>
</compile_context>

<pallas_src>
import functools

import jax
import jax.numpy as jnp
from jax.experimental import pallas as pl
from jax.experimental.pallas import tpu as pltpu


def _round_up(x: int, m: int) -> int:
    return ((x + m - 1) // m) * m


def _vmem_capacity_bytes() -> int:
    try:
        info = pltpu.get_tpu_info()
        cap = getattr(info, "vmem_capacity_bytes", None)
        if cap:
            return int(cap)
    except Exception:
        pass
    return 64 << 20  # conservative fallback: v7x per-TensorCore VMEM


def _make_linear_kernel(has_bias: bool, use_scratch: bool, precision):
    """Build the tiled-matmul kernel body for the given configuration."""

    def _partial_dot(x_tile, w_tile):
        # Contract on K without materializing a transpose of the (tn, tk)
        # weight tile (native "rhs-transposed" MXU matmul).
        return jax.lax.dot_general(
            x_tile,
            w_tile,
            dimension_numbers=(((1,), (1,)), ((), ())),
            preferred_element_type=jnp.float32,
            precision=precision,
        )

    if use_scratch:
        # Narrow output dtype: accumulate in an f32 VMEM scratch, cast once.
        def kernel(*refs):
            if has_bias:
                x_ref, w_ref, b_ref, o_ref, acc_ref = refs
            else:
                x_ref, w_ref, o_ref, acc_ref = refs
            k = pl.program_id(2)

            @pl.when(k == 0)
            def _():
                acc_ref[...] = jnp.zeros_like(acc_ref)

            acc_ref[...] += _partial_dot(x_ref[...], w_ref[...])

            @pl.when(k == pl.num_programs(2) - 1)
            def _():
                acc = acc_ref[...]
                if has_bias:
                    acc = acc + b_ref[...].astype(jnp.float32)
                o_ref[...] = acc.astype(o_ref.dtype)

    else:
        # f32 output: accumulate directly into the resident output block
        # (output block index is constant along k, so it stays in VMEM).
        def kernel(*refs):
            if has_bias:
                x_ref, w_ref, b_ref, o_ref = refs
            else:
                x_ref, w_ref, o_ref = refs
            k = pl.program_id(2)

            @pl.when(k == 0)
            def _():
                o_ref[...] = jnp.zeros_like(o_ref)

            o_ref[...] += _partial_dot(x_ref[...], w_ref[...])

            if has_bias:
                @pl.when(k == pl.num_programs(2) - 1)
                def _():
                    o_ref[...] += b_ref[...].astype(o_ref.dtype)

    return kernel


@functools.partial(
    jax.jit, static_argnames=("out_dtype", "tm", "tn", "tk", "precision")
)
def _linear_forward_impl(x, W, b, *, out_dtype, tm, tn, tk, precision):
    M, K = x.shape
    N, _ = W.shape

    compute_dtype = jnp.promote_types(x.dtype, W.dtype)
    x = x.astype(compute_dtype)
    W = W.astype(compute_dtype)
    has_bias = b is not None
    use_scratch = jnp.dtype(out_dtype) != jnp.dtype(jnp.float32)

    # --- Tile clamping ------------------------------------------------------
    # tm: sublane-aligned, but never collapse below 128 for tiny M (a tm=8 LHS
    # tile wastes the MXU; padded rows are free compute).  tn/tk: lane-aligned.
    tm = _round_up(min(tm, max(_round_up(M, 8), 128)), 8)
    tn = _round_up(min(tn, _round_up(N, 128)), 128)
    tk = _round_up(min(tk, _round_up(K, 128)), 128)

    # Megacore (v7x): if there is only one M block, split N into >=2 blocks so
    # both TensorCores get work on a "parallel" axis.
    if _round_up(M, tm) // tm == 1 and N > 128:
        tn = min(tn, max(_round_up((N + 1) // 2, 128), 128))

    Mp = _round_up(M, tm)
    Np = _round_up(N, tn)
    Kp = _round_up(K, tk)

    # TODO(synk): per-call padding of W costs an O(N*K) HBM pass; in a stateful
    # module, pad/layout the weight once at parameter-load time instead.
    xp = x if (Mp == M and Kp == K) else jnp.pad(x, ((0, Mp - M), (0, Kp - K)))
    Wp = W if (Np == N and Kp == K) else jnp.pad(W, ((0, Np - N), (0, Kp - K)))

    grid = (Mp // tm, Np // tn, Kp // tk)

    x_spec = pl.BlockSpec((tm, tk), lambda i, j, k: (i, k))
    w_spec = pl.BlockSpec((tn, tk), lambda i, j, k: (j, k))
    o_spec = pl.BlockSpec((tm, tn), lambda i, j, k: (i, j))

    in_item = jnp.dtype(compute_dtype).itemsize
    out_item = jnp.dtype(out_dtype).itemsize

    # Double-buffered per-step VMEM footprint of the pipeline.
    footprint = 2 * (tm * tk + tn * tk) * in_item + 2 * tm * tn * out_item
    if use_scratch:
        footprint += tm * tn * 4
    if has_bias:
        footprint += 2 * tn * in_item
    cap = _vmem_capacity_bytes()
    budget = max(cap - (4 << 20), 16 << 20)
    vmem_limit = int(min(budget, max(32 << 20, footprint + footprint // 2 + (1 << 20))))

    # Bytes actually moved, counting K-loop re-streaming: x is read once per
    # N-block column, W once per M-block row.
    n_i, n_j = grid[0], grid[1]
    bytes_accessed = (
        Mp * Kp * in_item * n_j
        + Np * Kp * in_item * n_i
        + Mp * Np * out_item
        + (Np * in_item * n_i if has_bias else 0)
    )
    cost = pl.CostEstimate(
        flops=2 * M * N * K, transcendentals=0, bytes_accessed=int(bytes_accessed)
    )

    compiler_params = pltpu.CompilerParams(
        dimension_semantics=("parallel", "parallel", "arbitrary"),
        vmem_limit_bytes=vmem_limit,
    )
    scratch = [pltpu.VMEM((tm, tn), jnp.float32)] if use_scratch else []

    kernel = _make_linear_kernel(has_bias, use_scratch, precision)

    in_specs = [x_spec, w_spec]
    operands = [xp, Wp]
    if has_bias:
        bp = b if Np == N else jnp.pad(b, (0, Np - N))
        operands.append(bp.reshape(1, Np))
        in_specs.append(pl.BlockSpec((1, tn), lambda i, j, k: (0, j)))

    out = pl.pallas_call(
        kernel,
        out_shape=jax.ShapeDtypeStruct((Mp, Np), out_dtype),
        grid_spec=pltpu.PrefetchScalarGridSpec(
            num_scalar_prefetch=0,
            grid=grid,
            in_specs=in_specs,
            out_specs=o_spec,
            scratch_shapes=scratch,
        ),
        compiler_params=compiler_params,
        cost_estimate=cost,
    )(*operands)

    if Mp != M or Np != N:
        out = out[:M, :N]
    return out


def linear_forward(
    x,
    W,
    b=None,
    *,
    tm: int = 512,
    tn: int = 512,
    tk: int = 1024,
    compute_dtype=None,
    precision=None,
):
    """Pallas TPU Linear forward: x @ W.T (+ b).

    x: (..., in_features), W: (out_features, in_features), b: (out_features,).
    Tiles are MXU/lane aligned; ragged M/N/K are zero-padded and sliced back.
    `compute_dtype=jnp.bfloat16` casts operands to the MXU-native dtype (f32
    accumulation kept); `precision=jax.lax.Precision.HIGHEST` forces
    bit-accurate f32 matmul at a throughput cost.
    """
    out_dtype = jnp.dtype(jnp.promote_types(x.dtype, W.dtype))
    if compute_dtype is not None:
        x = x.astype(compute_dtype)
        W = W.astype(compute_dtype)

    lead_shape = x.shape[:-1]
    x2d = x if x.ndim == 2 else x.reshape(-1, x.shape[-1])
    out = _linear_forward_impl(
        x2d, W, b, out_dtype=out_dtype, tm=tm, tn=tn, tk=tk, precision=precision
    )
    if x.ndim != 2:
        out = out.reshape(*lead_shape, W.shape[0])
    return out


# TODO(synk): _linear_star_set_forward operates on LinearStarSetBatch (list of
# custom star-set objects with V/c/H); no clean Pallas equivalent for the
# container type — only the dense tensor forward path is implemented here.


if __name__ == "__main__":
    key = jax.random.PRNGKey(0)
    k_x, k_w, k_b, k_x2, k_w2, k_b2 = jax.random.split(key, 6)

    # Small demo at module-consistent shapes.
    batch, in_features, out_features = 8, 32, 16
    x = jax.random.normal(k_x, (batch, in_features), dtype=jnp.float32)
    W = jax.random.normal(k_w, (out_features, in_features), dtype=jnp.float32)
    b = jax.random.normal(k_b, (out_features,), dtype=jnp.float32)

    out = linear_forward(x, W, b)
    jax.block_until_ready(out)
    ref = x @ W.T + b
    assert out.shape == (batch, out_features)
    assert jnp.allclose(out, ref, atol=1e-4, rtol=1e-4)

    # Ragged, multi-tile grid: exercises K accumulation, padding, megacore
    # N-split (default tiles) and explicit small tiles, with and without bias.
    M2, K2, N2 = 160, 300, 200
    x2 = jax.random.normal(k_x2, (M2, K2), dtype=jnp.float32)
    W2 = jax.random.normal(k_w2, (N2, K2), dtype=jnp.float32)
    b2 = jax.random.normal(k_b2, (N2,), dtype=jnp.float32)

    out2 = linear_forward(x2, W2, b2)                            # default tiles
    out3 = linear_forward(x2, W2, None, tm=64, tn=128, tk=128)   # explicit tiles
    jax.block_until_ready((out2, out3))
    ref2 = x2 @ W2.T + b2
    ref3 = x2 @ W2.T
    assert out2.shape == (M2, N2)
    assert jnp.allclose(out2, ref2, atol=1e-3, rtol=1e-4)
    assert jnp.allclose(out3, ref3, atol=1e-3, rtol=1e-4)

    # bf16 compute path (MXU-native), f32 accumulation, f32 output.
    out4 = linear_forward(x2, W2, b2, compute_dtype=jnp.bfloat16)
    jax.block_until_ready(out4)
    assert out4.dtype == jnp.float32
    assert jnp.allclose(out4, ref2, atol=1.0, rtol=5e-2)

    print("KERNEL_OK")
</pallas_src>

<mosaic_0001>
module attributes {stable_mosaic.version = 11 : i64} {
  func.func @kernel(%arg0: i32, %arg1: i32, %arg2: i32, %arg3: memref<128x128xf32, #tpu.memory_space<vmem>>, %arg4: memref<128x128xf32, #tpu.memory_space<vmem>>, %arg5: memref<1x128xf32, #tpu.memory_space<vmem>>, %arg6: memref<128x128xf32, #tpu.memory_space<vmem>>) attributes {dimension_semantics = [#tpu.dimension_semantics<parallel>, #tpu.dimension_semantics<parallel>, #tpu.dimension_semantics<arbitrary>], iteration_bounds = array<i64: 1, 1, 1>, scalar_prefetch = 0 : i64, scratch_operands = 0 : i64, tpu.core_type = #tpu.core_type<tc>, window_params = [{transform_indices = @transform_0, window_bounds = array<i64: 128, 128>}, {transform_indices = @transform_1, window_bounds = array<i64: 128, 128>}, {transform_indices = @transform_2, window_bounds = array<i64: 1, 128>}, {transform_indices = @transform_3, window_bounds = array<i64: 128, 128>}]} {
    %c0_i32 = arith.constant 0 : i32
    %0 = arith.cmpi eq, %arg2, %c0_i32 : i32
    %1 = arith.extui %0 : i1 to i32
    %c0_i32_0 = arith.constant 0 : i32
    %2 = arith.cmpi ne, %1, %c0_i32_0 : i32
    scf.if %2 {
      %cst_10 = arith.constant 0.000000e+00 : f32
      %12 = vector.broadcast %cst_10 : f32 to vector<128x128xf32>
      %c0_11 = arith.constant 0 : index
      %c0_12 = arith.constant 0 : index
      %13 = vector.load %arg6[%c0_11, %c0_12] : memref<128x128xf32, #tpu.memory_space<vmem>>, vector<128x128xf32>
      tpu.vector_store %arg6[%c0_11, %c0_12], %12 {strides = array<i32>} : memref<128x128xf32, #tpu.memory_space<vmem>>, vector<128x128xf32>,
    } else {
    }
    %c0 = arith.constant 0 : index
    %c0_1 = arith.constant 0 : index
    %3 = vector.load %arg6[%c0, %c0_1] : memref<128x128xf32, #tpu.memory_space<vmem>>, vector<128x128xf32>
    %c0_2 = arith.constant 0 : index
    %c0_3 = arith.constant 0 : index
    %4 = vector.load %arg3[%c0_2, %c0_3] : memref<128x128xf32, #tpu.memory_space<vmem>>, vector<128x128xf32>
    %c0_4 = arith.constant 0 : index
    %c0_5 = arith.constant 0 : index
    %5 = vector.load %arg4[%c0_4, %c0_5] : memref<128x128xf32, #tpu.memory_space<vmem>>, vector<128x128xf32>
    %cst = arith.constant dense<0.000000e+00> : vector<128x128xf32>
    %6 = tpu.matmul %4, %5, %cst {dimension_numbers = #tpu.dot_dimension_numbers<[1], [1], [0], [0], [0, 0, 1, 0], [], []>} : vector<128x128xf32>, vector<128x128xf32>, vector<128x128xf32> -> vector<128x128xf32>
    %7 = arith.addf %3, %6 : vector<128x128xf32>
    %c0_6 = arith.constant 0 : index
    %c0_7 = arith.constant 0 : index
    %8 = vector.load %arg6[%c0_6, %c0_7] : memref<128x128xf32, #tpu.memory_space<vmem>>, vector<128x128xf32>
    tpu.vector_store %arg6[%c0_6, %c0_7], %7 {strides = array<i32>} : memref<128x128xf32, #tpu.memory_space<vmem>>, vector<128x128xf32>,
    %c0_i32_8 = arith.constant 0 : i32
    %9 = arith.cmpi eq, %arg2, %c0_i32_8 : i32
    %10 = arith.extui %9 : i1 to i32
    %c0_i32_9 = arith.constant 0 : i32
    %11 = arith.cmpi ne, %10, %c0_i32_9 : i32
    scf.if %11 {
      %c0_10 = arith.constant 0 : index
      %c0_11 = arith.constant 0 : index
      %12 = vector.load %arg6[%c0_10, %c0_11] : memref<128x128xf32, #tpu.memory_space<vmem>>, vector<128x128xf32>
      %c0_12 = arith.constant 0 : index
      %c0_13 = arith.constant 0 : index
      %13 = vector.load %arg5[%c0_12, %c0_13] : memref<1x128xf32, #tpu.memory_space<vmem>>, vector<1x128xf32>
      %14 = vector.broadcast %13 : vector<1x128xf32> to vector<128x128xf32>
      %15 = arith.addf %12, %14 : vector<128x128xf32>
      %c0_14 = arith.constant 0 : index
      %c0_15 = arith.constant 0 : index
      %16 = vector.load %arg6[%c0_14, %c0_15] : memref<128x128xf32, #tpu.memory_space<vmem>>, vector<128x128xf32>
      tpu.vector_store %arg6[%c0_14, %c0_15], %15 {strides = array<i32>} : memref<128x128xf32, #tpu.memory_space<vmem>>, vector<128x128xf32>,
    } else {
    }
    return
  }
  func.func @transform_0(%arg0: i32, %arg1: i32, %arg2: i32) -> (i32, i32) {
    %c0_i32 = arith.constant 0 : i32
    return %arg0, %arg2 : i32, i32
  }
  func.func @transform_1(%arg0: i32, %arg1: i32, %arg2: i32) -> (i32, i32) {
    %c0_i32 = arith.constant 0 : i32
    return %arg1, %arg2 : i32, i32
  }
  func.func @transform_2(%arg0: i32, %arg1: i32, %arg2: i32) -> (i32, i32) {
    %c0_i32 = arith.constant 0 : i32
    %c0_i32_0 = arith.constant 0 : i32
    return %c0_i32, %arg1 : i32, i32
  }
  func.func @transform_3(%arg0: i32, %arg1: i32, %arg2: i32) -> (i32, i32) {
    %c0_i32 = arith.constant 0 : i32
    return %arg0, %arg1 : i32, i32
  }
}

</mosaic_0001>

<bundles_post_ra>
// kernel: _linear_forward_impl.1
= control target key start
LH: loop header
LB: loop body
LE: loop exit
PB: predicated region body
PF: predicated region fallthrough
CT: control target
= control target key end

     0   :  { %s455_s1 = inlined_call_operand.vmem [shape: f32[128,128], index: 1, kind: input, shape index: {}]   ;;  %s456_s2 = inlined_call_operand.vmem [shape: f32[1,128], index: 2, kind: input, shape index: {}]   ;;  %s457_s0 = inlined_call_operand.vmem [shape: f32[128,128], index: 0, kind: input, shape index: {}]   ;;  %s458_s3 = inlined_call_operand.vmem [shape: f32[128,128], index: 3, kind: output, shape index: {}]  }
   0x1   :  { %v81_v0 = vld [vmem:[%s455_s1 + $0x78] sm:$0xff]  ;;  %v80_v1 = vld [vmem:[%s455_s1 + $0x70] sm:$0xff]  ;;  %v79_v2 = vld [vmem:[%s455_s1 + $0x68] sm:$0xff] }
   0x2   :  { %239 = vmatpush.xpose.msra.mxu2 %v81_v0  ;;  %240 = vmatpush.xpose.msra.mxu3 %v81_v0  ;;  %v78_v3 = vld [vmem:[%s455_s1 + $0x60] sm:$0xff]  ;;  %v77_v4 = vld [vmem:[%s455_s1 + $0x58] sm:$0xff]  ;;  %v76_v5 = vld [vmem:[%s455_s1 + $0x50] sm:$0xff] }
   0x3   :  { %82 = vmatpush.xpose.msra.mxu0 %v81_v0  ;;  %238 = vmatpush.xpose.msra.mxu1 %v81_v0  ;;  %v75_v6 = vld [vmem:[%s455_s1 + $0x48] sm:$0xff]  ;;  %v74_v7 = vld [vmem:[%s455_s1 + $0x40] sm:$0xff]  ;;  %v73_v8 = vld [vmem:[%s455_s1 + $0x38] sm:$0xff] }
   0x4   :  { %v72_v9 = vld [vmem:[%s455_s1 + $0x30] sm:$0xff]  ;;  %v71_v10 = vld [vmem:[%s455_s1 + $0x28] sm:$0xff]  ;;  %v70_v11 = vld [vmem:[%s455_s1 + $0x20] sm:$0xff] }
   0x5   :  { %v69_v12 = vld [vmem:[%s455_s1 + $0x18] sm:$0xff]  ;;  %v68_v13 = vld [vmem:[%s455_s1 + $0x10] sm:$0xff]  ;;  %v67_v14 = vld [vmem:[%s455_s1 + $0x8] sm:$0xff] }
   0x6   :  { %242 = vmatpush.xpose.msra.mxu2 %v80_v1  ;;  %243 = vmatpush.xpose.msra.mxu3 %v80_v1  ;;  %v66_v15 = vld [vmem:[%s455_s1] sm:$0xff]  ;;  %v59_v20 = vld [vmem:[%s457_s0 + $0x48] sm:$0xff]  ;;  %v60_v24 = vld [vmem:[%s457_s0 + $0x50] sm:$0xff] }
   0x7   :  { %83 = vmatpush.xpose.msra.mxu0 %v80_v1  ;;  %241 = vmatpush.xpose.msra.mxu1 %v80_v1  ;;  %v58_v16 = vld [vmem:[%s457_s0 + $0x40] sm:$0xff]  ;;  %v63_v21 = vld [vmem:[%s457_s0 + $0x68] sm:$0xff]  ;;  %v64_v25 = vld [vmem:[%s457_s0 + $0x70] sm:$0xff] }
   0x8   :  { %v62_v17 = vld [vmem:[%s457_s0 + $0x60] sm:$0xff]  ;;  %v51_v22 = vld [vmem:[%s457_s0 + $0x8] sm:$0xff]  ;;  %v52_v26 = vld [vmem:[%s457_s0 + $0x10] sm:$0xff] }
   0x9   :  { %v50_v18 = vld [vmem:[%s457_s0] sm:$0xff]  ;;  %v55_v23 = vld [vmem:[%s457_s0 + $0x28] sm:$0xff]  ;;  %v56_v27 = vld [vmem:[%s457_s0 + $0x30] sm:$0xff] }
   0xa   :  { %245 = vmatpush.xpose.msra.mxu2 %v79_v2  ;;  %246 = vmatpush.xpose.msra.mxu3 %v79_v2  ;;  %v54_v19 = vld [vmem:[%s457_s0 + $0x20] sm:$0xff]  ;;  %v61_v28 = vld [vmem:[%s457_s0 + $0x58] sm:$0xff] }
   0xb   :  { %84 = vmatpush.xpose.msra.mxu0 %v79_v2  ;;  %244 = vmatpush.xpose.msra.mxu1 %v79_v2  ;;  %v65_v29 = vld [vmem:[%s457_s0 + $0x78] sm:$0xff]  ;;  %v287_v32 = vld [vmem:[%s456_s2] ss:$0 sm:$0xff] }
   0xc   :  { %v53_v30 = vld [vmem:[%s457_s0 + $0x18] sm:$0xff] }
   0xd   :  { %v57_v31 = vld [vmem:[%s457_s0 + $0x38] sm:$0xff] }
   0xe   :  { %248 = vmatpush.xpose.msra.mxu2 %v78_v3  ;;  %249 = vmatpush.xpose.msra.mxu3 %v78_v3 }
   0xf   :  { %85 = vmatpush.xpose.msra.mxu0 %v78_v3  ;;  %247 = vmatpush.xpose.msra.mxu1 %v78_v3 }
  0x12   :  { %251 = vmatpush.xpose.msra.mxu2 %v77_v4  ;;  %252 = vmatpush.xpose.msra.mxu3 %v77_v4 }
  0x13   :  { %86 = vmatpush.xpose.msra.mxu0 %v77_v4  ;;  %250 = vmatpush.xpose.msra.mxu1 %v77_v4 }
  0x16   :  { %254 = vmatpush.xpose.msra.mxu2 %v76_v5  ;;  %255 = vmatpush.xpose.msra.mxu3 %v76_v5 }
  0x17   :  { %87 = vmatpush.xpose.msra.mxu0 %v76_v5  ;;  %253 = vmatpush.xpose.msra.mxu1 %v76_v5 }
  0x1a   :  { %257 = vmatpush.xpose.msra.mxu2 %v75_v6  ;;  %258 = vmatpush.xpose.msra.mxu3 %v75_v6 }
  0x1b   :  { %88 = vmatpush.xpose.msra.mxu0 %v75_v6  ;;  %256 = vmatpush.xpose.msra.mxu1 %v75_v6 }
  0x1e   :  { %260 = vmatpush.xpose.msra.mxu2 %v74_v7  ;;  %261 = vmatpush.xpose.msra.mxu3 %v74_v7 }
  0x1f   :  { %89 = vmatpush.xpose.msra.mxu0 %v74_v7  ;;  %259 = vmatpush.xpose.msra.mxu1 %v74_v7 }
  0x22   :  { %263 = vmatpush.xpose.msra.mxu2 %v73_v8  ;;  %264 = vmatpush.xpose.msra.mxu3 %v73_v8 }
  0x23   :  { %90 = vmatpush.xpose.msra.mxu0 %v73_v8  ;;  %262 = vmatpush.xpose.msra.mxu1 %v73_v8 }
  0x26   :  { %266 = vmatpush.xpose.msra.mxu2 %v72_v9  ;;  %267 = vmatpush.xpose.msra.mxu3 %v72_v9 }
  0x27   :  { %91 = vmatpush.xpose.msra.mxu0 %v72_v9  ;;  %265 = vmatpush.xpose.msra.mxu1 %v72_v9 }
  0x2a   :  { %269 = vmatpush.xpose.msra.mxu2 %v71_v10  ;;  %270 = vmatpush.xpose.msra.mxu3 %v71_v10 }
  0x2b   :  { %92 = vmatpush.xpose.msra.mxu0 %v71_v10  ;;  %268 = vmatpush.xpose.msra.mxu1 %v71_v10 }
  0x2e   :  { %272 = vmatpush.xpose.msra.mxu2 %v70_v11  ;;  %273 = vmatpush.xpose.msra.mxu3 %v70_v11 }
  0x2f   :  { %93 = vmatpush.xpose.msra.mxu0 %v70_v11  ;;  %271 = vmatpush.xpose.msra.mxu1 %v70_v11 }
  0x32   :  { %275 = vmatpush.xpose.msra.mxu2 %v69_v12  ;;  %276 = vmatpush.xpose.msra.mxu3 %v69_v12 }
  0x33   :  { %94 = vmatpush.xpose.msra.mxu0 %v69_v12  ;;  %274 = vmatpush.xpose.msra.mxu1 %v69_v12 }
  0x36   :  { %278 = vmatpush.xpose.msra.mxu2 %v68_v13  ;;  %279 = vmatpush.xpose.msra.mxu3 %v68_v13 }
  0x37   :  { %95 = vmatpush.xpose.msra.mxu0 %v68_v13  ;;  %277 = vmatpush.xpose.msra.mxu1 %v68_v13 }
  0x3a   :  { %281 = vmatpush.xpose.msra.mxu2 %v67_v14  ;;  %282 = vmatpush.xpose.msra.mxu3 %v67_v14 }
  0x3b   :  { %96 = vmatpush.xpose.msra.mxu0 %v67_v14  ;;  %280 = vmatpush.xpose.msra.mxu1 %v67_v14 }
  0x3e   :  { %284 = vmatpush.xpose.msra.mxu2 %v66_v15  ;;  %285 = vmatpush.xpose.msra.mxu3 %v66_v15 }
  0x3f   :  { %97 = vmatpush.xpose.msra.mxu0 %v66_v15  ;;  %283 = vmatpush.xpose.msra.mxu1 %v66_v15 }
  0x41   :  { %122 = vmatmul.f32.vlgmr.msra.gmra.mxu2 %v58_v16  ;;  %134 = vmatmul.f32.vlgmr.msra.gmra.mxu3 %v62_v17 }
  0x42   :  { %98 = vmatmul.f32.vlgmr.msra.gmra.mxu0 %v50_v18  ;;  %110 = vmatmul.f32.vlgmr.msra.gmra.mxu1 %v54_v19 }
  0x49   :  { %125 = vmatmul.f32.gmra.mxu2 %v59_v20  ;;  %137 = vmatmul.f32.gmra.mxu3 %v63_v21 }
  0x4a   :  { %101 = vmatmul.f32.gmra.mxu0 %v51_v22  ;;  %113 = vmatmul.f32.gmra.mxu1 %v55_v23 }
  0x51   :  { %128 = vmatmul.f32.gmra.mxu2 %v60_v24  ;;  %140 = vmatmul.f32.gmra.mxu3 %v64_v25 }
  0x52   :  { %104 = vmatmul.f32.gmra.mxu0 %v52_v26  ;;  %116 = vmatmul.f32.gmra.mxu1 %v56_v27 }
  0x59   :  { %131 = vmatmul.f32.gmra.mxu2 %v61_v28  ;;  %143 = vmatmul.f32.gmra.mxu3 %v65_v29 }
  0x5a   :  { %107 = vmatmul.f32.gmra.mxu0 %v53_v30  ;;  %119 = vmatmul.f32.gmra.mxu1 %v57_v31 }
  0xbf   :  { %v99_v33 = vpop.f32.mrf.mxu0  ;;  %v111_v34 = vpop.f32.mrf.mxu1 }
  0xc0   :  { %v202_v35 = vadd.f32 %v287_v32, %v99_v33  ;;  %v206_v36 = vadd.f32 %v287_v32, %v111_v34 }
  0xc2   :  { %218 = vst [vmem:[%s458_s3] sm:$0xff] %v202_v35 }
  0xc3   :  { %222 = vst [vmem:[%s458_s3 + $0x20] sm:$0xff] %v206_v36 }
  0xc4   :  { %v123_v37 = vpop.f32.mrf.mxu2  ;;  %v135_v38 = vpop.f32.mrf.mxu3 }
  0xc5   :  { %v210_v39 = vadd.f32 %v287_v32, %v123_v37  ;;  %v214_v40 = vadd.f32 %v287_v32, %v135_v38 }
  0xc7   :  { %v102_v41 = vpop.f32.mrf.mxu0  ;;  %v114_v42 = vpop.f32.mrf.mxu1  ;;  %226 = vst [vmem:[%s458_s3 + $0x40] sm:$0xff] %v210_v39 }
  0xc8   :  { %230 = vst [vmem:[%s458_s3 + $0x60] sm:$0xff] %v214_v40  ;;  %v203_v43 = vadd.f32 %v287_v32, %v102_v41  ;;  %v207_v44 = vadd.f32 %v287_v32, %v114_v42 }
  0xca   :  { %219 = vst [vmem:[%s458_s3 + $0x8] sm:$0xff] %v203_v43 }
  0xcb   :  { %223 = vst [vmem:[%s458_s3 + $0x28] sm:$0xff] %v207_v44 }
  0xcc   :  { %v126_v45 = vpop.f32.mrf.mxu2  ;;  %v138_v46 = vpop.f32.mrf.mxu3 }
  0xcd   :  { %v211_v47 = vadd.f32 %v287_v32, %v126_v45  ;;  %v215_v48 = vadd.f32 %v287_v32, %v138_v46 }
  0xcf   :  { %v105_v49 = vpop.f32.mrf.mxu0  ;;  %v117_v50 = vpop.f32.mrf.mxu1  ;;  %227 = vst [vmem:[%s458_s3 + $0x48] sm:$0xff] %v211_v47 }
  0xd0   :  { %231 = vst [vmem:[%s458_s3 + $0x68] sm:$0xff] %v215_v48  ;;  %v204_v51 = vadd.f32 %v287_v32, %v105_v49  ;;  %v208_v52 = vadd.f32 %v287_v32, %v117_v50 }
  0xd2   :  { %220 = vst [vmem:[%s458_s3 + $0x10] sm:$0xff] %v204_v51 }
  0xd3   :  { %224 = vst [vmem:[%s458_s3 + $0x30] sm:$0xff] %v208_v52 }
  0xd4   :  { %v129_v53 = vpop.f32.mrf.mxu2  ;;  %v141_v54 = vpop.f32.mrf.mxu3 }
  0xd5   :  { %v212_v55 = vadd.f32 %v287_v32, %v129_v53  ;;  %v216_v56 = vadd.f32 %v287_v32, %v141_v54 }
  0xd7   :  { %v108_v57 = vpop.f32.mrf.mxu0  ;;  %v120_v58 = vpop.f32.mrf.mxu1  ;;  %228 = vst [vmem:[%s458_s3 + $0x50] sm:$0xff] %v212_v55 }
  0xd8   :  { %232 = vst [vmem:[%s458_s3 + $0x70] sm:$0xff] %v216_v56  ;;  %v205_v59 = vadd.f32 %v287_v32, %v108_v57  ;;  %v209_v60 = vadd.f32 %v287_v32, %v120_v58 }
  0xda   :  { %221 = vst [vmem:[%s458_s3 + $0x18] sm:$0xff] %v205_v59 }
  0xdb   :  { %225 = vst [vmem:[%s458_s3 + $0x38] sm:$0xff] %v209_v60 }
  0xdc   :  { %v132_v61 = vpop.f32.mrf.mxu2  ;;  %v144_v62 = vpop.f32.mrf.mxu3 }
  0xdd   :  { %v213_v63 = vadd.f32 %v287_v32, %v132_v61  ;;  %v217_v0 = vadd.f32 %v287_v32, %v144_v62 }
  0xdf   :  { %229 = vst [vmem:[%s458_s3 + $0x58] sm:$0xff] %v213_v63 }
  0xe0   :  { %233 = vst [vmem:[%s458_s3 + $0x78] sm:$0xff] %v217_v0 }

</bundles_post_ra>
